<compile_context>
chip_gen: v5e
topology: v5e:2x2
jax: 0.10.0
libtpu: 0.0.40
codegen_flags: <defaults>
</compile_context>

<pallas_src>
import functools
import numpy as np
import jax
import jax.numpy as jnp
from jax.experimental import pallas as pl
from jax.experimental.pallas import tpu as pltpu

LOG_STD_MIN = -20.0
LOG_STD_MAX = 2.0


def _cluster_kernel(xt_ref, mu_s_ref, inv_std_ref, half_mu2_ref, log_mix_ref,
                    const_ref,
                    post_ref, clp_ref, aux_ref):
    # Everything lane-dense: batch on the 128-wide lane axis.
    x_t = xt_ref[...].astype(jnp.float32)               # (D, TB)
    inv_std = inv_std_ref[...]                           # (D, 1)  exp(-logstd)
    mu_s = mu_s_ref[...]                                 # (K, D)  mu * inv_std
    half_mu2 = half_mu2_ref[...]                         # (K, 1)  0.5*||mu/std||^2
    log_mix = log_mix_ref[...]                           # (K, 1)  log_softmax(mix)
    const = const_ref[0]                                 # scalar  sum(logstd)+0.5*D*log(2pi)

    # ---- component_log_prob: Normal(mu, exp(logstd)).log_prob(x).sum(-1) ----
    x_s = x_t * inv_std                                  # (D, TB)
    x2 = jnp.sum(x_s * x_s, axis=0, keepdims=True)       # (1, TB)  XLU reduce
    xm = jax.lax.dot_general(                            # (K, TB)  MXU, lane-dense N
        mu_s, x_s, dimension_numbers=(((1,), (0,)), ((), ())),
        preferred_element_type=jnp.float32)
    # Guarded expansion of -0.5*||(x-mu)/std||^2 (sq >= 0  <=>  -0.5*sq <= 0).
    # TODO(synk): the expanded x2 - 2<x,mu> + mu2 form loses relative precision
    # when x is extremely close to a component mean; switch to the direct
    # (x - mu) form if exactness near means ever matters.
    neg_half_sq = jnp.minimum(xm - 0.5 * x2 - half_mu2, 0.0)   # (K, TB)
    log_comp = neg_half_sq - const                              # (K, TB)

    # ---- posterior: one exp + one (1,TB) reciprocal, no second full-tile exp ----
    logits = log_comp + log_mix                                 # (K, TB)
    lmax = jnp.max(logits, axis=0, keepdims=True)               # (1, TB)
    p = jnp.exp(logits - lmax)                                  # (K, TB)  single EUP pass
    s = jnp.sum(p, axis=0, keepdims=True)                       # (1, TB)
    post = p * pl.reciprocal(s)                                 # (K, TB)
    lse = lmax + jnp.log(s)                                     # (1, TB)

    post_ref[...] = post
    clp_ref[...] = log_comp
    # log_data (row 0) and kl (row 1) packed into one (2, TB) output slab.
    aux_ref[0:1, :] = jnp.sum(post * log_comp, axis=0, keepdims=True)
    # kl = sum(post * (log_post - log_mix));  log_post - log_mix == log_comp - lse
    aux_ref[1:2, :] = jnp.sum(post * (log_comp - lse), axis=0, keepdims=True)


def _pick_block_b(B, requested):
    """Multiple-of-128 batch tile; keep >=2 grid steps when B allows (v7x 2 TCs)."""
    assert requested % 128 == 0, "block_b must be a multiple of 128"
    half = 128 * pl.cdiv(pl.cdiv(B, 2), 128)
    return max(128, min(requested, half))


@functools.partial(jax.jit, static_argnames=("block_b",))
def cluster_forward(x, comp_mean, comp_logstd, mix_logit, *, block_b=1024):
    B, D = x.shape
    K = comp_mean.shape[0]

    # ---- grid-invariant weight-side precompute, hoisted out of the kernel ----
    logstd = jnp.clip(comp_logstd.astype(jnp.float32),
                      LOG_STD_MIN, LOG_STD_MAX)                   # (1, D)
    inv_std = jnp.exp(-logstd)                                    # (1, D)
    mu_s = comp_mean.astype(jnp.float32) * inv_std                # (K, D)
    half_mu2 = 0.5 * jnp.sum(mu_s * mu_s, axis=1, keepdims=True)  # (K, 1)
    log_mix = jax.nn.log_softmax(
        mix_logit.astype(jnp.float32).reshape(-1)).reshape(K, 1)  # (K, 1)
    const = (jnp.sum(logstd)
             + 0.5 * D * np.log(2.0 * np.pi)).reshape(1).astype(jnp.float32)
    inv_std_col = inv_std.reshape(D, 1)                           # (D, 1)

    # ---- lane-dense x: transpose once in the wrapper, pad batch to the tile ----
    bb = _pick_block_b(B, block_b)
    nb = pl.cdiv(B, bb)
    b_pad = nb * bb
    x_t = x.astype(jnp.float32).T                                 # (D, B)
    if b_pad != B:
        x_t = jnp.pad(x_t, ((0, 0), (0, b_pad - B)))

    out_shape = (
        jax.ShapeDtypeStruct((K, b_pad), jnp.float32),   # posterior^T
        jax.ShapeDtypeStruct((K, b_pad), jnp.float32),   # comp_log_prob^T
        jax.ShapeDtypeStruct((2, b_pad), jnp.float32),   # [log_data ; kl]
    )
    post_t, clp_t, aux = pl.pallas_call(
        _cluster_kernel,
        out_shape=out_shape,
        grid_spec=pltpu.PrefetchScalarGridSpec(
            num_scalar_prefetch=0,
            grid=(nb,),
            in_specs=[
                pl.BlockSpec((D, bb), lambda i: (0, i)),            # x^T tile
                pl.BlockSpec((K, D), lambda i: (0, 0)),             # mu * inv_std
                pl.BlockSpec((D, 1), lambda i: (0, 0)),             # inv_std column
                pl.BlockSpec((K, 1), lambda i: (0, 0)),             # 0.5*||mu/std||^2
                pl.BlockSpec((K, 1), lambda i: (0, 0)),             # log_softmax(mix)
                pl.BlockSpec(memory_space=pltpu.MemorySpace.SMEM),  # const scalar
            ],
            out_specs=[
                pl.BlockSpec((K, bb), lambda i: (0, i)),
                pl.BlockSpec((K, bb), lambda i: (0, i)),
                pl.BlockSpec((2, bb), lambda i: (0, i)),
            ],
        ),
        compiler_params=pltpu.CompilerParams(
            dimension_semantics=("parallel",),
            vmem_limit_bytes=32 * 1024 * 1024),
    )(x_t, mu_s, inv_std_col, half_mu2, log_mix, const)

    # Layout plumbing back to the module's natural shapes.
    post = post_t[:, :B].T            # (B, K)
    clp = clp_t[:, :B].T              # (B, K)
    return post, clp, aux[0, :B], aux[1, :B]


def cluster_forward_ref(x, comp_mean, comp_logstd, mix_logit):
    """Pure-JAX reference mirroring the PyTorch module (with_elbo=True)."""
    logstd = jnp.clip(comp_logstd, LOG_STD_MIN, LOG_STD_MAX)       # (1, D)
    std = jnp.exp(logstd)
    xk = x[:, None, :]                                             # (B, 1, D)
    log_comp = jnp.sum(
        -0.5 * ((xk - comp_mean[None]) / std) ** 2
        - logstd - 0.5 * jnp.log(2.0 * jnp.pi), axis=-1)           # (B, K)
    log_mix = jax.nn.log_softmax(mix_logit)[None]                  # (1, K)
    log_prob_x = jax.nn.logsumexp(log_mix + log_comp, axis=-1, keepdims=True)
    log_post = log_comp + log_mix - log_prob_x
    post = jnp.exp(log_post)
    kl = jnp.sum(post * (log_post - log_mix), axis=-1)
    log_data = jnp.sum(post * log_comp, axis=-1)
    return post, log_comp, log_data, kl


if __name__ == "__main__":
    # batch, n_latent_landmarks, embed_size.  B=512 gives a 2-step grid with the
    # auto-selected 256-wide tile (exercises the pipeline and the v7x 2-TC split).
    B, K, D = 512, 16, 32

    key = jax.random.PRNGKey(0)
    k1, k2, k3 = jax.random.split(key, 3)
    comp_mean = (jax.random.normal(k1, (K, D), jnp.float32)
                 * np.sqrt(1.0 / K)).astype(jnp.float32)
    comp_logstd = (jax.random.normal(k2, (1, D), jnp.float32) / np.e
                   ).astype(jnp.float32)
    mix_logit = jnp.ones((K,), jnp.float32)   # learned_prior init = ones
    x = jax.random.normal(k3, (B, D), jnp.float32)

    post, clp, log_data, kl = cluster_forward(x, comp_mean, comp_logstd, mix_logit)
    jax.block_until_ready((post, clp, log_data, kl))

    post_r, clp_r, log_data_r, kl_r = cluster_forward_ref(
        x, comp_mean, comp_logstd, mix_logit)

    np.testing.assert_allclose(np.asarray(post), np.asarray(post_r),
                               rtol=1e-4, atol=1e-4)
    np.testing.assert_allclose(np.asarray(clp), np.asarray(clp_r),
                               rtol=1e-4, atol=1e-4)
    np.testing.assert_allclose(np.asarray(log_data), np.asarray(log_data_r),
                               rtol=1e-4, atol=1e-4)
    np.testing.assert_allclose(np.asarray(kl), np.asarray(kl_r),
                               rtol=1e-4, atol=1e-4)

    print("KERNEL_OK")
</pallas_src>

<mosaic_0001>
module attributes {stable_mosaic.version = 11 : i64} {
  func.func @_cluster_kernel(%arg0: i32, %arg1: memref<32x256xf32, #tpu.memory_space<vmem>>, %arg2: memref<16x32xf32, #tpu.memory_space<vmem>>, %arg3: memref<32x1xf32, #tpu.memory_space<vmem>>, %arg4: memref<16x1xf32, #tpu.memory_space<vmem>>, %arg5: memref<16x1xf32, #tpu.memory_space<vmem>>, %arg6: memref<1xf32, #tpu.memory_space<smem>>, %arg7: memref<16x256xf32, #tpu.memory_space<vmem>>, %arg8: memref<16x256xf32, #tpu.memory_space<vmem>>, %arg9: memref<2x256xf32, #tpu.memory_space<vmem>>) attributes {dimension_semantics = [#tpu.dimension_semantics<parallel>], iteration_bounds = array<i64: 2>, scalar_prefetch = 0 : i64, scratch_operands = 0 : i64, tpu.core_type = #tpu.core_type<tc>, window_params = [{transform_indices = @transform_0, window_bounds = array<i64: 32, 256>}, {pipeline_mode = #tpu.pipeline_mode<synchronous>, transform_indices = @transform_1, window_bounds = array<i64: 16, 32>}, {pipeline_mode = #tpu.pipeline_mode<synchronous>, transform_indices = @transform_2, window_bounds = array<i64: 32, 1>}, {pipeline_mode = #tpu.pipeline_mode<synchronous>, transform_indices = @transform_3, window_bounds = array<i64: 16, 1>}, {pipeline_mode = #tpu.pipeline_mode<synchronous>, transform_indices = @transform_4, window_bounds = array<i64: 16, 1>}, {transform_indices = @transform_5, window_bounds = array<i64: 1>}, {transform_indices = @transform_6, window_bounds = array<i64: 16, 256>}, {transform_indices = @transform_7, window_bounds = array<i64: 16, 256>}, {transform_indices = @transform_8, window_bounds = array<i64: 2, 256>}]} {
    %c0 = arith.constant 0 : index
    %c0_0 = arith.constant 0 : index
    %0 = vector.load %arg1[%c0, %c0_0] : memref<32x256xf32, #tpu.memory_space<vmem>>, vector<32x256xf32>
    %c0_1 = arith.constant 0 : index
    %c0_2 = arith.constant 0 : index
    %1 = vector.load %arg3[%c0_1, %c0_2] : memref<32x1xf32, #tpu.memory_space<vmem>>, vector<32x1xf32>
    %c0_3 = arith.constant 0 : index
    %c0_4 = arith.constant 0 : index
    %2 = vector.load %arg2[%c0_3, %c0_4] : memref<16x32xf32, #tpu.memory_space<vmem>>, vector<16x32xf32>
    %c0_5 = arith.constant 0 : index
    %c0_6 = arith.constant 0 : index
    %3 = vector.load %arg4[%c0_5, %c0_6] : memref<16x1xf32, #tpu.memory_space<vmem>>, vector<16x1xf32>
    %c0_7 = arith.constant 0 : index
    %c0_8 = arith.constant 0 : index
    %4 = vector.load %arg5[%c0_7, %c0_8] : memref<16x1xf32, #tpu.memory_space<vmem>>, vector<16x1xf32>
    %c0_9 = arith.constant 0 : index
    %5 = memref.load %arg6[%c0_9] : memref<1xf32, #tpu.memory_space<smem>>
    %6 = vector.broadcast %1 : vector<32x1xf32> to vector<32x256xf32>
    %7 = arith.mulf %0, %6 : vector<32x256xf32>
    %8 = arith.mulf %7, %7 : vector<32x256xf32>
    %cst = arith.constant dense<0.000000e+00> : vector<256xf32>
    %9 = vector.multi_reduction <add>, %8, %cst [0] : vector<32x256xf32> to vector<256xf32>
    %10 = vector.shape_cast %9 : vector<256xf32> to vector<1x256xf32>
    %cst_10 = arith.constant dense<0.000000e+00> : vector<16x256xf32>
    %11 = tpu.matmul %2, %7, %cst_10 {dimension_numbers = #tpu.dot_dimension_numbers<[1], [0], [0], [1], [0, 0, 1, 1], [], []>} : vector<16x32xf32>, vector<32x256xf32>, vector<16x256xf32> -> vector<16x256xf32>
    %cst_11 = arith.constant 5.000000e-01 : f32
    %12 = vector.broadcast %cst_11 : f32 to vector<1x256xf32>
    %13 = arith.mulf %12, %10 : vector<1x256xf32>
    %14 = vector.broadcast %13 : vector<1x256xf32> to vector<16x256xf32>
    %15 = arith.subf %11, %14 : vector<16x256xf32>
    %16 = vector.broadcast %3 : vector<16x1xf32> to vector<16x256xf32>
    %17 = arith.subf %15, %16 : vector<16x256xf32>
    %cst_12 = arith.constant 0.000000e+00 : f32
    %18 = vector.broadcast %cst_12 : f32 to vector<16x256xf32>
    %19 = arith.minimumf %17, %18 : vector<16x256xf32>
    %20 = vector.broadcast %5 : f32 to vector<16x256xf32>
    %21 = arith.subf %19, %20 : vector<16x256xf32>
    %22 = vector.broadcast %4 : vector<16x1xf32> to vector<16x256xf32>
    %23 = arith.addf %21, %22 : vector<16x256xf32>
    %cst_13 = arith.constant dense<0xFF800000> : vector<256xf32>
    %24 = vector.multi_reduction <maximumf>, %23, %cst_13 [0] : vector<16x256xf32> to vector<256xf32>
    %25 = vector.shape_cast %24 : vector<256xf32> to vector<1x256xf32>
    %26 = vector.broadcast %25 : vector<1x256xf32> to vector<16x256xf32>
    %27 = arith.subf %23, %26 : vector<16x256xf32>
    %28 = math.exp %27 : vector<16x256xf32>
    %cst_14 = arith.constant dense<0.000000e+00> : vector<256xf32>
    %29 = vector.multi_reduction <add>, %28, %cst_14 [0] : vector<16x256xf32> to vector<256xf32>
    %30 = vector.shape_cast %29 : vector<256xf32> to vector<1x256xf32>
    %31 = tpu.reciprocal %30 : vector<1x256xf32> -> vector<1x256xf32>
    %32 = vector.broadcast %31 : vector<1x256xf32> to vector<16x256xf32>
    %33 = arith.mulf %28, %32 : vector<16x256xf32>
    %34 = math.log %30 : vector<1x256xf32>
    %35 = arith.addf %25, %34 : vector<1x256xf32>
    %c0_15 = arith.constant 0 : index
    %c0_16 = arith.constant 0 : index
    %36 = vector.load %arg7[%c0_15, %c0_16] : memref<16x256xf32, #tpu.memory_space<vmem>>, vector<16x256xf32>
    tpu.vector_store %arg7[%c0_15, %c0_16], %33 {strides = array<i32>} : memref<16x256xf32, #tpu.memory_space<vmem>>, vector<16x256xf32>,
    %c0_17 = arith.constant 0 : index
    %c0_18 = arith.constant 0 : index
    %37 = vector.load %arg8[%c0_17, %c0_18] : memref<16x256xf32, #tpu.memory_space<vmem>>, vector<16x256xf32>
    tpu.vector_store %arg8[%c0_17, %c0_18], %21 {strides = array<i32>} : memref<16x256xf32, #tpu.memory_space<vmem>>, vector<16x256xf32>,
    %38 = arith.mulf %33, %21 : vector<16x256xf32>
    %cst_19 = arith.constant dense<0.000000e+00> : vector<256xf32>
    %39 = vector.multi_reduction <add>, %38, %cst_19 [0] : vector<16x256xf32> to vector<256xf32>
    %40 = vector.shape_cast %39 : vector<256xf32> to vector<1x256xf32>
    %c0_20 = arith.constant 0 : index
    %c0_21 = arith.constant 0 : index
    %41 = vector.load %arg9[%c0_20, %c0_21] : memref<2x256xf32, #tpu.memory_space<vmem>>, vector<1x256xf32>
    tpu.vector_store %arg9[%c0_20, %c0_21], %40 {strides = array<i32>} : memref<2x256xf32, #tpu.memory_space<vmem>>, vector<1x256xf32>,
    %42 = vector.broadcast %35 : vector<1x256xf32> to vector<16x256xf32>
    %43 = arith.subf %21, %42 : vector<16x256xf32>
    %44 = arith.mulf %33, %43 : vector<16x256xf32>
    %cst_22 = arith.constant dense<0.000000e+00> : vector<256xf32>
    %45 = vector.multi_reduction <add>, %44, %cst_22 [0] : vector<16x256xf32> to vector<256xf32>
    %46 = vector.shape_cast %45 : vector<256xf32> to vector<1x256xf32>
    %c1 = arith.constant 1 : index
    %c0_23 = arith.constant 0 : index
    %47 = vector.load %arg9[%c1, %c0_23] : memref<2x256xf32, #tpu.memory_space<vmem>>, vector<1x256xf32>
    tpu.vector_store %arg9[%c1, %c0_23], %46 {strides = array<i32>} : memref<2x256xf32, #tpu.memory_space<vmem>>, vector<1x256xf32>,
    return
  }
  func.func @transform_0(%arg0: i32) -> (i32, i32) {
    %c0_i32 = arith.constant 0 : i32
    %c0_i32_0 = arith.constant 0 : i32
    return %c0_i32, %arg0 : i32, i32
  }
  func.func @transform_1(%arg0: i32) -> (i32, i32) {
    %c0_i32 = arith.constant 0 : i32
    %c0_i32_0 = arith.constant 0 : i32
    %c0_i32_1 = arith.constant 0 : i32
    return %c0_i32, %c0_i32_0 : i32, i32
  }
  func.func @transform_2(%arg0: i32) -> (i32, i32) {
    %c0_i32 = arith.constant 0 : i32
    %c0_i32_0 = arith.constant 0 : i32
    %c0_i32_1 = arith.constant 0 : i32
    return %c0_i32, %c0_i32_0 : i32, i32
  }
  func.func @transform_3(%arg0: i32) -> (i32, i32) {
    %c0_i32 = arith.constant 0 : i32
    %c0_i32_0 = arith.constant 0 : i32
    %c0_i32_1 = arith.constant 0 : i32
    return %c0_i32, %c0_i32_0 : i32, i32
  }
  func.func @transform_4(%arg0: i32) -> (i32, i32) {
    %c0_i32 = arith.constant 0 : i32
    %c0_i32_0 = arith.constant 0 : i32
    %c0_i32_1 = arith.constant 0 : i32
    return %c0_i32, %c0_i32_0 : i32, i32
  }
  func.func @transform_5(%arg0: i32) -> i32 {
    %c0_i32 = arith.constant 0 : i32
    %c0_i32_0 = arith.constant 0 : i32
    return %c0_i32 : i32
  }
  func.func @transform_6(%arg0: i32) -> (i32, i32) {
    %c0_i32 = arith.constant 0 : i32
    %c0_i32_0 = arith.constant 0 : i32
    return %c0_i32, %arg0 : i32, i32
  }
  func.func @transform_7(%arg0: i32) -> (i32, i32) {
    %c0_i32 = arith.constant 0 : i32
    %c0_i32_0 = arith.constant 0 : i32
    return %c0_i32, %arg0 : i32, i32
  }
  func.func @transform_8(%arg0: i32) -> (i32, i32) {
    %c0_i32 = arith.constant 0 : i32
    %c0_i32_0 = arith.constant 0 : i32
    return %c0_i32, %arg0 : i32, i32
  }
}

</mosaic_0001>

<bundles_post_ra>
// kernel: cluster_forward.1
= control target key start
LH: loop header
LB: loop body
LE: loop exit
PB: predicated region body
PF: predicated region fallthrough
CT: control target
= control target key end

     0   :  { %s1387_s0 = inlined_call_operand.hbm [shape: f32[32,512], index: 0, kind: input, shape index: {}]   ;;  %s1388_s1 = inlined_call_operand.vmem [shape: f32[16,32], index: 1, kind: input, shape index: {}]   ;;  %s1389_s2 = inlined_call_operand.vmem [shape: f32[32,1], index: 2, kind: input, shape index: {}]   ;;  %s1390_s3 = inlined_call_operand.vmem [shape: f32[16,1], index: 3, kind: input, shape index: {}]   ;;  %s1391_s4 = inlined_call_operand.vmem [shape: f32[16,1], index: 4, kind: input, shape index: {}]   ;;  %s1392_s5 = inlined_call_operand.<no memory space> [shape: f32[1], index: 5, kind: input, shape index: {}]   ;;  %s1393_s6 = inlined_call_operand.hbm [shape: f32[16,512], index: 6, kind: output, shape index: {0}]   ;;  %s1394_s7 = inlined_call_operand.hbm [shape: f32[16,512], index: 7, kind: output, shape index: {1}]   ;;  %s1395_s8 = inlined_call_operand.vmem [shape: f32[2,512], index: 8, kind: output, shape index: {2}]  }
   0x1   :  { %14 = sst [smem:[#allocation2]] %s1392_s5 }
   0x2   :  { %15 = vsyncpa [#allocation4], 0 }
   0x3   :  { %17 = vsyncpa [#allocation4 + $0x1], 0 }
   0x4   :  { %18 = vsyncpa [#allocation5], 0 }
   0x5   :  { %20 = vsyncpa [#allocation5 + $0x1], 0 }
   0x6   :  { %21 = vsyncpa [#allocation8], 0 }
   0x7   :  { %23 = vsyncpa [#allocation8 + $0x1], 0  ;;  %s1143_s29 = smov 0   ;;  %s1145_s30 = smov 0  }
   0x8   :  { %s1147_s9 = smov 0   ;;  %s1149_s10 = smov 0  }
   0x9 LB: > { %s1164_s5 = sadd.s32 4294967295, %s1086_s10   ;;  %s845_s11 = sadd.s32 4294967294, %s1086_s10   ;;  %s1086_s10 = sphi %s1149_s10, %s1410_s10   ;;  %s1082_s9 = sphi %s1147_s9, %s1409_s9   ;;  %s1078_s30 = sphi %s1145_s30, %s1408_s30   ;;  %s1074_s29 = sphi %s1143_s29, %s1407_s29  }
   0xa   : > { %s1168_s12 = sadd.s32 1, %s1086_s10   ;;  %s36_s13 = sadd.s32 1, %s1082_s9 }
   0xb   : > { %s33_s14 = ssub.s32 %s1086_s10, %s1168_s12  ;;  %p43_p0 = scmp.ne.s32.totalorder %s1082_s9, %s1078_s30 }
   0xc   : > { %p34_p1 = scmp.eq.s32.totalorder %s33_s14, 0  ;;  %p44_p2 = scmp.eq.s32.totalorder %s1086_s10, 0 }
   0xd   : > { %p49_p3 = scmp.ne.s32.totalorder %s1078_s30, %s1074_s29  ;;  %p50_p4 = scmp.eq.s32.totalorder %s1164_s5, 0 }
   0xe   : > { %s1180_s15 = scalar_select %p34_p1, %s1082_s9, %s36_s13  }
   0xf   : > { %p1182_p5 = por %p44_p2, %p43_p0  ;;  %p1186_p6 = por %p50_p4, %p49_p3 }
  0x10   : > { %1397 = sst [smem:[#allocation12_spill]] %s1180_s15  ;;  %p178_p7 = scmp.eq.s32.totalorder %s1164_s5, 1 }
  0x11   : > { %p184_p8 = scmp.eq.s32.totalorder %s845_s11, 1  ;;  %p847_p9 = scmp.ge.s32.totalorder %s1086_s10, 2 }
  0x12   : > { %p898_p10 = scmp.lt.s32.totalorder %s1086_s10, 2  ;;  %p1193_p11 = por %p178_p7, %p43_p0 }
  0x13   : > { %p1197_p12 = por %p184_p8, %p49_p3  ;;  %s271_s20 = sand.u32 1, %s1082_s9  }
  0x14   : > { %s870_s21 = sshll.u32 %s1086_s10, 4  ;;  %s848_s22 = sshll.u32 %s271_s20, 6 }
  0x15   : > { %s280_s25 = scalar_lea.hbm %s1387_s0, %s870_s21  ;;  %s275_s27 = scalar_lea.vmem [#allocation3], %s848_s22 }
  0x16   : > { %s281_s26 = sshll.u32 %s280_s25, 4  ;;  %s283_s28 = sshll.u32 %s275_s27, 4  ;;  %s282_s26 = int_to_ptr.hbm [resolvable:$true] %s281_s26  ;;  %s284_s28 = int_to_ptr.vmem [resolvable:$true] %s283_s28 }
  0x17   : > { %p1208_p13 = pnand %p898_p10, %p1182_p5  ;;  %p851_p0 = scmp.ge.s32.totalorder %s1086_s10, 1 }
  0x18   : > { %s272_s13 = scalar_lea.sflag [#allocation4], %s271_s20  ;;  %s958_s14 = sshra.s32 %s282_s26, 4  ;;  %s959_s14 = int_to_ptr.hbm [resolvable:$true] %s958_s14 }
  0x19   : > { %s960_s15 = scalar_lea.hbm %s959_s14, 64  ;;  %p962_p2 = pneg %p1208_p13 }
  0x1a   : > { %p961_p1 = scmp.ne.s32.totalorder %s959_s14, %s960_s15  ;;  %s965_s23 = scalar_lea.hbm %s1387_s0, 128 }
  0x1b   : > { %p966_p5 = scmp.lt.s32.totalorder %s959_s14, %s1387_s0  ;;  %p967_p7 = scmp.lt.s32.totalorder %s965_s23, %s960_s15 }
  0x1c   : > { %p963_p3 = pnand %p962_p2, %p961_p1 }
  0x1d   : > { %p968_p8 = por %p967_p7, %p966_p5 }
  0x1e   : > { %p964_p4 = pneg %p963_p3 }
  0x20   : > { %p969_p10 = pnand %p968_p8, %p964_p4 }
  0x22   : > { %972 = shalt.err (!%p969_p10)
}
  0x23   : > { %s1088_s20 = smov 512   ;;  %s1089_s25 = smov 256  }
  0x24   : > { %s1090_s27 = smov 16   ;;  %p291_p1 = scmp.lt.s32.totalorder %s1086_s10, 3 }
  0x25   : > { %890 = dma.hbm_to_vmem [thread:$0]  (!%p1208_p13), %s282_s26, 1024, %s284_s28, %s272_s13, %s1088_s20, %s1089_s25, %s1090_s27  }
  0x26   : > { %p292_p2 = pnand %p851_p0, %p291_p1 }
  0x27   : > { %s1227_s21 = sand.u32 (!%p292_p2), 1, %s1078_s30  }
  0x28   : > { %295 = sbr.rel (%p292_p2) target bundleno = 406 (0x196), region = 44  ;;  %s852_s15 = sshll.u32 (!%p292_p2), %s1227_s21, 6 }
  0x29   : > { %s298_s14 = scalar_lea.sflag (!%p292_p2), [#allocation4], %s1227_s21  ;;  %s1231_s22 = scalar_lea.vmem (!%p292_p2), [#allocation3], %s852_s15 }
  0x2d   : > { %1061 = dma.done.wait (%p1186_p6), %s298_s14, 1024  }
  0x2e   : > { %1063 = vsyncadd (%p1186_p6), %s298_s14, 4294966272  ;;  %v1091_v0 = vmov 0   ;;  %v365_v1 = vld [vmem:[%s1389_s2 + $0x18] sm:$0xff]  ;;  %v363_v2 = vld [vmem:[%s1389_s2 + $0x8] sm:$0xff]  ;;  %vm427_vm0 = vcmask 261120   ;;  %s372_s17 = sld [smem:[#allocation2]] }
  0x2f   : > { %940 = vset.pattern.permute.xlu1 %v1091_v0  ;;  %939 = vset.pattern.permute.xlu0 %v1091_v0  ;;  %v364_v3 = vld [vmem:[%s1389_s2 + $0x10] sm:$0xff]  ;;  %v362_v4 = vld [vmem:[%s1389_s2] sm:$0xff]  ;;  %v371_v6 = vld [vmem:[%s1391_s4 + $0x8] sm:$0xff]  ;;  %s1396_s24 = sshll.u32 %s1227_s21, 5  ;;  %s871_s20 = sshll.u32 %s1164_s5, 4 }
  0x30   : > { %941 = vset.pattern.permute.xlu2 %v1091_v0  ;;  %390 = vperm.xlu0 %939, %v365_v1   ;;  %v370_v5 = vld [vmem:[%s1391_s4] sm:$0xff]  ;;  %v369_v8 = vld [vmem:[%s1390_s3 + $0x8] sm:$0xff]  ;;  %v360_v9 = vld [vmem:[%s1231_s22 + $0x30] sm:$0xff]  ;;  %s337_s25 = scalar_lea.vmem [#allocation7], %s1396_s24  ;;  %s706_s14 = scalar_lea.hbm %s1394_s7, %s871_s20 }
  0x31   : > { %380 = vperm.xlu1 %940, %v363_v2   ;;  %v368_v7 = vld [vmem:[%s1390_s3] sm:$0xff]  ;;  %v361_v10 = vld [vmem:[%s1231_s22 + $0x38] sm:$0xff]  ;;  %v356_v15 = vld [vmem:[%s1231_s22 + $0x10] sm:$0xff]  ;;  %s707_s26 = sshll.u32 %s337_s25, 4  ;;  %s709_s28 = sshll.u32 %s706_s14, 4  ;;  %s1290_s26 = int_to_ptr.vmem [resolvable:$true] %s707_s26  ;;  %s710_s28 = int_to_ptr.hbm [resolvable:$true] %s709_s28 }
  0x32   : > { %488 = vperm.xlu2 %941, %v368_v7   ;;  %v357_v16 = vld [vmem:[%s1231_s22 + $0x18] sm:$0xff]  ;;  %v358_v17 = vld [vmem:[%s1231_s22 + $0x20] sm:$0xff]  ;;  %v359_v18 = vld [vmem:[%s1231_s22 + $0x28] sm:$0xff]  ;;  %s673_s11 = scalar_lea.sflag [#allocation8], %s1227_s21 }
  0x33   : > { %v354_v19 = vld [vmem:[%s1231_s22] sm:$0xff]  ;;  %v355_v20 = vld [vmem:[%s1231_s22 + $0x8] sm:$0xff]  ;;  %s1002_s22 = sshra.s32 %s710_s28, 4  ;;  %s1003_s22 = int_to_ptr.hbm [resolvable:$true] %s1002_s22 }
  0x34   : > { %v366_v38 = vld [vmem:[%s1388_s1] sm:$0xff]  ;;  %v367_v42 = vld [vmem:[%s1388_s1 + $0x8] sm:$0xff]  ;;  %v504_v1 = vstv %s372_s17  ;;  %s1004_s13 = scalar_lea.hbm %s1003_s22, 32  ;;  %s1008_s17 = scalar_lea.hbm %s1394_s7, 64 }
  0x35   : > { %p1005_p6 = scmp.ne.s32.totalorder %s1003_s22, %s1004_s13  ;;  %p1009_p3 = scmp.lt.s32.totalorder %s1003_s22, %s1394_s7 }
  0x36   : > { %p1010_p4 = scmp.lt.s32.totalorder %s1008_s17, %s1004_s13 }
  0x37   : > { %p1006_p13 = pnand %p1005_p6, %p1193_p11 }
  0x38   : > { %385 = vperm.xlu0 %939, %v364_v3   ;;  %p1011_p5 = por %p1010_p4, %p1009_p3 }
  0x39   : > { %375 = vperm.xlu1 %940, %v362_v4   ;;  %p1007_p0 = pneg %p1006_p13 }
  0x3a   : > { %493 = vperm.xlu2 %941, %v369_v8  }
  0x3b   : > { %p1012_p7 = pnand %p1011_p5, %p1007_p0 }
  0x40   : > { %511 = vperm.xlu0 %939, %v370_v5  }
  0x41   : > { %516 = vperm.xlu1 %940, %v371_v6  }
  0x8c   : > { %v489_v57 = vpop.permute.xlu2 %488 }
  0xa2   : > { %v391_v11 = vpop.permute.xlu0 %390 }
  0xa3   : > { %v381_v12 = vpop.permute.xlu1 %380  ;;  %v399_v13 = vmul.f32 %v391_v11, %v360_v9  ;;  %v400_v14 = vmul.f32 %v391_v11, %v361_v10  ;;  %v494_v10 = vpop.permute.xlu2 %493 }
  0xa4   : > { %v395_v21 = vmul.f32 %v381_v12, %v356_v15  ;;  %v396_v22 = vmul.f32 %v381_v12, %v357_v16 }
  0xa5   : > { %446 = vmatpush.msra.mxu0 %v399_v13  ;;  %873 = vmatpush.msra.mxu2 %v399_v13  ;;  %v407_v37 = vmul.f32 %v399_v13, %v399_v13  ;;  %v408_v39 = vmul.f32 %v400_v14, %v400_v14 }
  0xa6   : > { %469 = vmatpush.msra.mxu1 %v400_v14  ;;  %877 = vmatpush.msra.mxu3 %v400_v14  ;;  %v403_v29 = vmul.f32 %v395_v21, %v395_v21  ;;  %v404_v30 = vmul.f32 %v396_v22, %v396_v22 }
  0xaa   : > { %v386_v23 = vpop.permute.xlu0 %385 }
  0xab   : > { %v376_v24 = vpop.permute.xlu1 %375  ;;  %v397_v25 = vmul.f32 %v386_v23, %v358_v17  ;;  %v398_v26 = vmul.f32 %v386_v23, %v359_v18 }
  0xac   : > { %v393_v27 = vmul.f32 %v376_v24, %v354_v19  ;;  %v394_v28 = vmul.f32 %v376_v24, %v355_v20 }
  0xad   : > { %447 = vmatpush.msra.mxu0 %v397_v25  ;;  %v405_v33 = vmul.f32 %v397_v25, %v397_v25  ;;  %874 = vmatpush.msra.mxu2 %v397_v25  ;;  %v406_v34 = vmul.f32 %v398_v26, %v398_v26 }
  0xae   : > { %v401_v31 = vmul.f32 %v393_v27, %v393_v27  ;;  %v402_v32 = vmul.f32 %v394_v28, %v394_v28  ;;  %470 = vmatpush.msra.mxu1 %v398_v26  ;;  %878 = vmatpush.msra.mxu3 %v398_v26 }
  0xaf   : > { %448 = vmatpush.msra.mxu0 %v395_v21  ;;  %875 = vmatpush.msra.mxu2 %v395_v21 }
  0xb0   : > { %v409_v35 = vadd.f32 %v403_v29, %v401_v31  ;;  %v418_v36 = vadd.f32 %v404_v30, %v402_v32  ;;  %471 = vmatpush.msra.mxu1 %v396_v22  ;;  %879 = vmatpush.msra.mxu3 %v396_v22 }
  0xb1   : > { %449 = vmatpush.msra.mxu0 %v393_v27  ;;  %876 = vmatpush.msra.mxu2 %v393_v27 }
  0xb2   : > { %v410_v40 = vadd.f32 %v409_v35, %v405_v33  ;;  %v419_v41 = vadd.f32 %v418_v36, %v406_v34  ;;  %472 = vmatpush.msra.mxu1 %v394_v28  ;;  %880 = vmatpush.msra.mxu3 %v394_v28  ;;  %v512_v17 = vpop.permute.xlu0 %511 }
  0xb3   : > { %857 = vmatmul.msk.f32.vlgmr.msra.gmra.mxu0 %vm427_vm0, %v366_v38  ;;  %858 = vmatmul.msk.f32.vlgmr.msra.gmra.mxu2 %vm427_vm0, %v367_v42  ;;  %v517_v18 = vpop.permute.xlu1 %516 }
  0xb4   : > { %v411_v43 = vadd.f32 %v410_v40, %v407_v37  ;;  %v420_v44 = vadd.f32 %v419_v41, %v408_v39  ;;  %859 = vmatmul.msk.f32.vlgmr.msra.gmra.mxu1 %vm427_vm0, %v366_v38  ;;  %860 = vmatmul.msk.f32.vlgmr.msra.gmra.mxu3 %vm427_vm0, %v367_v42 }
  0xb6   : > { %v412_v45 = vrot.slane %v411_v43, 4  ;;  %v421_v46 = vrot.slane %v420_v44, 4 }
  0xb8   : > { %v413_v47 = vadd.f32 %v412_v45, %v411_v43  ;;  %v422_v48 = vadd.f32 %v421_v46, %v420_v44 }
  0xba   : > { %v414_v49 = vrot.slane %v413_v47, 2  ;;  %v423_v50 = vrot.slane %v422_v48, 2 }
  0xbc   : > { %v415_v51 = vadd.f32 %v414_v49, %v413_v47  ;;  %v424_v52 = vadd.f32 %v423_v50, %v422_v48 }
  0xbe   : > { %v416_v53 = vrot.slane %v415_v51, 1  ;;  %v425_v54 = vrot.slane %v424_v52, 1 }
  0xc0   : > { %v417_v55 = vadd.f32 %v416_v53, %v415_v51  ;;  %v426_v56 = vadd.f32 %v425_v54, %v424_v52 }
  0xc2   : > { %v480_v58 = vmul.f32 0.5, %v417_v55  ;;  %v481_v60 = vmul.f32 0.5, %v426_v56 }
 0x130   : > { %v451_v59 = vpop.f32.mrf.mxu0 }
 0x131   : > { %v482_v61 = vsub.f32 %v451_v59, %v480_v58  ;;  %v474_v62 = vpop.f32.mrf.mxu1 }
 0x132   : > { %v483_v63 = vsub.f32 %v474_v62, %v481_v60 }
 0x133   : > { %v496_v0 = vsub.f32 %v482_v61, %v489_v57 }
 0x134   : > { %v497_v2 = vsub.f32 %v483_v63, %v489_v57 }
 0x135   : > { %v500_v3 = vmin.f32 %v496_v0, 0.0 }
 0x136   : > { %v501_v4 = vmin.f32 %v497_v2, 0.0  ;;  %v454_v6 = vpop.f32.mrf.mxu2 }
 0x137   : > { %v1277_v5 = vsub.f32 %v500_v3, %v504_v1  ;;  %v484_v8 = vsub.f32 %v454_v6, %v480_v58  ;;  %v477_v9 = vpop.f32.mrf.mxu3 }
 0x138   : > { %v1279_v7 = vsub.f32 %v501_v4, %v504_v1  ;;  %v485_v11 = vsub.f32 %v477_v9, %v481_v60 }
 0x139   : > { %605 = vst [vmem:[%s337_s25] sm:$0xff] %v1277_v5  ;;  %v498_v12 = vsub.f32 %v484_v8, %v494_v10  ;;  %v519_v20 = vadd.f32 %v512_v17, %v1277_v5 }
 0x13a   : > { %606 = vst [vmem:[%s337_s25 + $0x8] sm:$0xff] %v1279_v7  ;;  %v499_v13 = vsub.f32 %v485_v11, %v494_v10  ;;  %v520_v22 = vadd.f32 %v512_v17, %v1279_v7 }
 0x13b   : > { %v502_v14 = vmin.f32 %v498_v12, 0.0 }
 0x13c   : > { %v503_v15 = vmin.f32 %v499_v13, 0.0 }
 0x13d   : > { %v1292_v16 = vsub.f32 %v502_v14, %v504_v1 }
 0x13e   : > { %v1294_v19 = vsub.f32 %v503_v15, %v504_v1 }
 0x13f   : > { %v521_v21 = vadd.f32 %v517_v18, %v1292_v16  ;;  %607 = vst [vmem:[%s337_s25 + $0x10] sm:$0xff] %v1292_v16 }
 0x140   : > { %v522_v23 = vadd.f32 %v517_v18, %v1294_v19  ;;  %608 = vst [vmem:[%s337_s25 + $0x18] sm:$0xff] %v1294_v19 }
 0x141   : > { %v523_v24 = vmax.f32 %v519_v20, %v521_v21 }
 0x142   : > { %1015 = shalt.err (!%p1012_p7)
}
 0x143   : > { %s1092_s25 = smov 256   ;;  %s1093_s14 = smov 512   ;;  %v530_v25 = vmax.f32 %v520_v22, %v522_v23  ;;  %v524_v26 = vrot.slane %v523_v24, 4 }
 0x144   : > { %s1094_s24 = smov 16   ;;  %s1403_s22 = sshll.u32 %s1227_s21, 5 }
 0x145   : > { %884 = dma.vmem_to_hbm [thread:$0]  (%p1193_p11), %s1290_s26, 512, %s710_s28, %s673_s11, %s1092_s25, %s1093_s14, %s1094_s24   ;;  %v531_v27 = vrot.slane %v530_v25, 4  ;;  %v525_v28 = vmax.f32 %v523_v24, %v524_v26 }
 0x146   : > { %s689_s11 = scalar_lea.hbm %s1393_s6, %s871_s20  ;;  %s330_s13 = scalar_lea.vmem [#allocation6], %s1403_s22 }
 0x147   : > { %v532_v29 = vmax.f32 %v530_v25, %v531_v27  ;;  %v526_v30 = vrot.slane %v525_v28, 2  ;;  %s690_s23 = sshll.u32 %s330_s13, 4  ;;  %s692_s20 = sshll.u32 %s689_s11, 4  ;;  %s1335_s23 = int_to_ptr.vmem [resolvable:$true] %s690_s23  ;;  %s1340_s20 = int_to_ptr.hbm [resolvable:$true] %s692_s20 }
 0x148   : > { %s668_s17 = scalar_lea.sflag [#allocation5], %s1227_s21  ;;  %s1030_s27 = sshra.s32 %s1340_s20, 4  ;;  %s1031_s27 = int_to_ptr.hbm [resolvable:$true] %s1030_s27 }
 0x149   : > { %v533_v31 = vrot.slane %v532_v29, 2  ;;  %v527_v32 = vmax.f32 %v525_v28, %v526_v30  ;;  %s1032_s15 = scalar_lea.hbm %s1031_s27, 32  ;;  %s1036_s11 = scalar_lea.hbm %s1393_s6, 64 }
 0x14a   : > { %p1033_p8 = scmp.ne.s32.totalorder %s1031_s27, %s1032_s15  ;;  %p1037_p2 = scmp.lt.s32.totalorder %s1031_s27, %s1393_s6 }
 0x14b   : > { %v534_v33 = vmax.f32 %v532_v29, %v533_v31  ;;  %v528_v34 = vrot.slane %v527_v32, 1  ;;  %p1038_p6 = scmp.lt.s32.totalorder %s1036_s11, %s1032_s15 }
 0x14c   : > { %p1034_p10 = pnand %p1033_p8, %p1193_p11 }
 0x14d   : > { %v535_v35 = vrot.slane %v534_v33, 1  ;;  %v529_v36 = vmax.f32 %v527_v32, %v528_v34  ;;  %p1039_p13 = por %p1038_p6, %p1037_p2 }
 0x14e   : > { %p1035_p1 = pneg %p1034_p10 }
 0x14f   : > { %v536_v37 = vmax.f32 %v534_v33, %v535_v35  ;;  %v537_v38 = vsub.f32 %v519_v20, %v529_v36  ;;  %v539_v39 = vsub.f32 %v521_v21, %v529_v36 }
 0x150   : > { %p1040_p0 = pnand %p1039_p13, %p1035_p1 }
 0x151   : > { %v538_v40 = vsub.f32 %v520_v22, %v536_v37  ;;  %v540_v41 = vsub.f32 %v522_v23, %v536_v37  ;;  %v541_v42 = vmul.f32 1.442695, %v537_v38  ;;  %v545_v43 = vmul.f32 1.442695, %v539_v39 }
 0x153   : > { %v543_v44 = vmul.f32 1.442695, %v538_v40  ;;  %v547_v45 = vmul.f32 1.442695, %v540_v41  ;;  %942 = vpow2.f32 %v541_v42 }
 0x154   : > { %944 = vpow2.f32 %v545_v43 }
 0x155   : > { %946 = vpow2.f32 %v543_v44 }
 0x156   : > { %948 = vpow2.f32 %v547_v45 }
 0x159   : > { %v943_v46 = vpop.eup %942 }
 0x15a   : > { %v945_v47 = vpop.eup %944 }
 0x15b   : > { %v1317_v48 = vpop.eup %946  ;;  %v549_v49 = vadd.f32 %v945_v47, %v943_v46 }
 0x15c   : > { %v1319_v50 = vpop.eup %948 }
 0x15d   : > { %v550_v51 = vrot.slane %v549_v49, 4  ;;  %v556_v52 = vadd.f32 %v1319_v50, %v1317_v48 }
 0x15f   : > { %v551_v53 = vadd.f32 %v550_v51, %v549_v49  ;;  %v557_v54 = vrot.slane %v556_v52, 4 }
 0x161   : > { %v552_v55 = vrot.slane %v551_v53, 2  ;;  %v558_v56 = vadd.f32 %v557_v54, %v556_v52 }
 0x163   : > { %v553_v57 = vadd.f32 %v552_v55, %v551_v53  ;;  %v559_v58 = vrot.slane %v558_v56, 2 }
 0x165   : > { %v554_v59 = vrot.slane %v553_v57, 1  ;;  %v560_v60 = vadd.f32 %v559_v58, %v558_v56 }
 0x167   : > { %v555_v61 = vadd.f32 %v554_v59, %v553_v57  ;;  %v561_v62 = vrot.slane %v560_v60, 1 }
 0x169   : > { %950 = vrcp.f32 %v555_v61  ;;  %v562_v63 = vadd.f32 %v561_v62, %v560_v60  ;;  %v574_v8 = vand.u32 2147483648, %v555_v61  ;;  %v572_v13 = vand.u32 2147483647, %v555_v61 }
 0x16a   : > { %952 = vlog2.f32 %v555_v61  ;;  %vm568_vm2 = vweird.f32 %v555_v61 }
 0x16b   : > { %954 = vrcp.f32 %v562_v63  ;;  %v575_v20 = vor.u32 1.1754944e-38, %v574_v8  ;;  %v586_v23 = vand.u32 2147483647, %v562_v63  ;;  %v588_v24 = vand.u32 2147483648, %v562_v63 }
 0x16c   : > { %956 = vlog2.f32 %v562_v63  ;;  %vm573_vm5 = vcmp.eq.f32.partialorder %v572_v13, 8.507059e+37  ;;  %vm582_vm6 = vweird.f32 %v562_v63 }
 0x16d   : > { %vm587_vm8 = vcmp.eq.f32.partialorder %v586_v23, 8.507059e+37  ;;  %v589_v33 = vor.u32 1.1754944e-38, %v588_v24 }
 0x16f   : > { %v951_v0 = vpop.eup %950 }
 0x170   : > { %v953_v1 = vpop.eup %952  ;;  %v564_v2 = vmul.f32 %v951_v0, %v555_v61  ;;  %vm569_vm1 = vweird.f32 %v951_v0 }
 0x171   : > { %v596_v3 = vmul.f32 0.6931472, %v953_v1  ;;  %v955_v4 = vpop.eup %954  ;;  %vm570_vm3 = vmor %vm568_vm2, %vm569_vm1 }
 0x172   : > { %v565_v6 = vsub.f32 1.0, %v564_v2  ;;  %v957_v9 = vpop.eup %956  ;;  %v578_v11 = vmul.f32 %v955_v4, %v562_v63  ;;  %vm583_vm4 = vweird.f32 %v955_v4 }
 0x173   : > { %v599_v10 = vadd.f32 %v596_v3, %v529_v36  ;;  %v598_v14 = vmul.f32 0.6931472, %v957_v9  ;;  %vm584_vm7 = vmor %vm582_vm6, %vm583_vm4 }
 0x174   : > { %v566_v12 = vmul.f32 %v951_v0, %v565_v6  ;;  %v579_v17 = vsub.f32 1.0, %v578_v11 }
 0x175   : > { %v640_v15 = vsub.f32 %v1292_v16, %v599_v10  ;;  %v600_v21 = vadd.f32 %v598_v14, %v536_v37  ;;  %v638_v31 = vsub.f32 %v1277_v5, %v599_v10 }
 0x176   : > { %v567_v18 = vadd.f32 %v951_v0, %v566_v12  ;;  %v580_v22 = vmul.f32 %v955_v4, %v579_v17 }
 0x177   : > { %v641_v26 = vsub.f32 %v1294_v19, %v600_v21  ;;  %v639_v43 = vsub.f32 %v1279_v7, %v600_v21 }
 0x178   : > { %v571_v25 = vsel %vm570_vm3, %v951_v0, %v567_v18  ;;  %v581_v28 = vadd.f32 %v955_v4, %v580_v22 }
 0x179   : > { %v576_v27 = vsel %vm573_vm5, %v575_v20, %v571_v25 }
 0x17a   : > { %v591_v29 = vmul.f32 %v943_v46, %v576_v27  ;;  %v593_v30 = vmul.f32 %v945_v47, %v576_v27  ;;  %v585_v32 = vsel %vm584_vm7, %v955_v4, %v581_v28 }
 0x17b   : > { %v590_v38 = vsel %vm587_vm8, %v589_v33, %v585_v32 }
 0x17c   : > { %601 = vst [vmem:[%s330_s13] sm:$0xff] %v591_v29  ;;  %v609_v34 = vmul.f32 %v591_v29, %v1277_v5  ;;  %v611_v35 = vmul.f32 %v593_v30, %v1292_v16  ;;  %v642_v36 = vmul.f32 %v638_v31, %v591_v29  ;;  %v644_v37 = vmul.f32 %v640_v15, %v593_v30 }
 0x17d   : > { %603 = vst [vmem:[%s330_s13 + $0x10] sm:$0xff] %v593_v30  ;;  %v592_v41 = vmul.f32 %v1317_v48, %v590_v38  ;;  %v594_v42 = vmul.f32 %v1319_v50, %v590_v38 }
 0x17e   : > { %v613_v39 = vadd.f32 %v611_v35, %v609_v34  ;;  %v646_v40 = vadd.f32 %v644_v37, %v642_v36 }
 0x17f   : > { %602 = vst [vmem:[%s330_s13 + $0x8] sm:$0xff] %v592_v41  ;;  %v610_v44 = vmul.f32 %v592_v41, %v1279_v7  ;;  %v612_v45 = vmul.f32 %v594_v42, %v1294_v19  ;;  %v643_v46 = vmul.f32 %v639_v43, %v592_v41  ;;  %v645_v47 = vmul.f32 %v641_v26, %v594_v42 }
 0x180   : > { %v614_v5 = vrot.slane %v613_v39, 4  ;;  %v647_v16 = vrot.slane %v646_v40, 4  ;;  %604 = vst [vmem:[%s330_s13 + $0x18] sm:$0xff] %v594_v42 }
 0x181   : > { %v620_v50 = vadd.f32 %v612_v45, %v610_v44 }
 0x182   : > { %v615_v48 = vadd.f32 %v614_v5, %v613_v39  ;;  %v648_v49 = vadd.f32 %v647_v16, %v646_v40 }
 0x183   : > { %1043 = shalt.err (!%p1040_p0)
}
 0x184   : > { %883 = dma.vmem_to_hbm [thread:$0]  (%p1193_p11), %s1335_s23, 512, %s1340_s20, %s668_s17, %s1092_s25, %s1093_s14, %s1094_s24   ;;  %v653_v7 = vadd.f32 %v645_v47, %v643_v46  ;;  %v616_v19 = vrot.slane %v615_v48, 2  ;;  %v621_v51 = vrot.slane %v620_v50, 4  ;;  %v649_v52 = vrot.slane %v648_v49, 2 }
 0x185   : > { %s1404_s21 = sshll.u32 %s1164_s5, 1  ;;  %v633_v0 = vlaneseq  ;;  %vm630_vm9 = vcmask 1040384  }
 0x186   : > { %p349_p3 = scmp.lt.s32.totalorder %s1404_s21, 3  ;;  %v654_v53 = vrot.slane %v653_v7, 4  ;;  %v622_v54 = vadd.f32 %v621_v51, %v620_v50  ;;  %v617_v56 = vadd.f32 %v616_v19, %v615_v48  ;;  %v650_v58 = vadd.f32 %v649_v52, %v648_v49  ;;  %s1405_s18 = smov %s1404_s21 }
 0x187   : > { %vm635_vm10 = vcmp.lt.s32.totalorder %v633_v0, 256 }
 0x188   : > { %v655_v55 = vadd.f32 %v654_v53, %v653_v7  ;;  %v623_v57 = vrot.slane %v622_v54, 2  ;;  %s1412_s18 = smov (!%p349_p3, %s1405_s18), 3  ;;  %v618_v62 = vrot.slane %v617_v56, 1  ;;  %v651_v1 = vrot.slane %v650_v58, 1 }
 0x189   : > { %s856_s24 = sshll.u32 %s1412_s18, 1 }
 0x18a   : > { %v656_v59 = vrot.slane %v655_v55, 2  ;;  %v624_v60 = vadd.f32 %v623_v57, %v622_v54  ;;  %v619_v6 = vadd.f32 %v618_v62, %v617_v56  ;;  %s352_s13 = scalar_lea.vmem %s1395_s8, %s856_s24  ;;  %v652_v9 = vadd.f32 %v651_v1, %v650_v58 }
 0x18c   : > { %v657_v61 = vadd.f32 %v656_v59, %v655_v55  ;;  %v625_v63 = vrot.slane %v624_v60, 1 }
 0x18e   : > { %v658_v2 = vrot.slane %v657_v61, 1  ;;  %v626_v3 = vadd.f32 %v625_v63, %v624_v60 }
 0x190   : > { %v659_v4 = vadd.f32 %v658_v2, %v657_v61  ;;  %v629_v8 = vrot.slane %v626_v3, 7 }
 0x192   : > { %v662_v10 = vrot.slane %v659_v4, 7  ;;  %v631_v11 = vsel %vm630_vm9, %v619_v6, %v629_v8 }
 0x193   : > { %637 = vst.msk [vmem:[%s352_s13] ss:$2 sm:$0x3] %vm635_vm10, %v631_v11 }
 0x194   : > { %v663_v12 = vsel %vm630_vm9, %v652_v9, %v662_v10 }
 0x195   : > { %861 = vst.msk [vmem:[%s352_s13 + $0x1] ss:$2 sm:$0x3] %vm635_vm10, %v663_v12 }
 0x196 PF: > { %s728_s5 = sand.u32 1, %s1074_s29   ;;  %p892_p11 = pnand %p847_p9, %p1197_p12 }
 0x197   : > { %s729_s23 = scalar_lea.sflag [#allocation5], %s728_s5 }
 0x198   : > { %p893_p4 = pneg %p892_p11 }
 0x19a   : > { %1065 = dma.done.wait (%p893_p4), %s729_s23, 512  }
 0x19b   : > { %1067 = vsyncadd (%p893_p4), %s729_s23, 4294966784  ;;  %s739_s20 = scalar_lea.sflag [#allocation8], %s728_s5 }
 0x19c   : > { %1069 = dma.done.wait (%p893_p4), %s739_s20, 512  }
 0x19d   : > { %1071 = vsyncadd (%p893_p4), %s739_s20, 4294966784  ;;  %s1406_s16 = sld [smem:[#allocation12_spill]]  ;;  %p26_p5 = scmp.ge.s32.totalorder %s1168_s12, 4  }
 0x19e   : > { %s1407_s29 = smov %s1078_s30  ;;  %s1408_s30 = smov %s1082_s9 }
 0x19f   : > { %s1410_s10 = smov %s1168_s12  ;;  %28 = sbr.rel (!%p26_p5) target bundleno = 9 (0x9), region = 119 }
 0x1a3   : > { %s1409_s9 = smov %s1406_s16 }
 0x1a4   :  { %753 = vsyncpa [#allocation4], 1 }
 0x1a5   :  { %755 = vsyncpa [#allocation4 + $0x1], 1 }
 0x1a6   :  { %756 = vsyncpa [#allocation5], 1 }
 0x1a7   :  { %758 = vsyncpa [#allocation5 + $0x1], 1 }
 0x1a8   :  { %759 = vsyncpa [#allocation8], 1 }
 0x1a9   :  { %761 = vsyncpa [#allocation8 + $0x1], 1 }

</bundles_post_ra>
